<compile_context>
chip_gen: v6e
topology: v6e:2x2x1
jax: 0.10.0
libtpu: 0.0.40
codegen_flags: <defaults>
</compile_context>

<pallas_src>
import jax
import jax.numpy as jnp
import numpy as np
from jax.experimental import pallas as pl
from jax.experimental.pallas import tpu as pltpu


def _round_up(x: int, m: int) -> int:
    return (x + m - 1) // m * m


# ---------------------------------------------------------------------------
# Streaming FiLM multiply-add over a (row, spatial) grid.
#   x_ref : [TR, TS]  activation tile (input dtype)
#   gb_ref: [TR, 2]   per-row (scale, shift) in f32 — resident across the
#                     inner spatial grid axis (index map (i, 0)).
# ---------------------------------------------------------------------------
def _film_tile_kernel(x_ref, gb_ref, o_ref):
    x = x_ref[...].astype(jnp.float32)
    s = gb_ref[:, 0:1]          # [TR, 1] -> broadcast over the lane axis
    t = gb_ref[:, 1:2]
    o_ref[...] = (x * s + t).astype(o_ref.dtype)


def _choose_tiles(R: int, S: int, itemsize: int):
    """Pick (TR, TS) from a VMEM byte budget.

    ~4 MiB per x tile -> ~16 MiB live (double-buffered input + output), which
    leaves headroom inside the 32 MiB scoped-VMEM limit and fits v7x's 64 MiB
    physical VMEM comfortably while saturating HBM bandwidth on big tensors.
    """
    LANE = 128
    sublane = max(8, 32 // itemsize)          # 8 f32, 16 bf16, 32 int8/fp8
    budget = 4 * 1024 * 1024                  # bytes per x tile

    R_r = _round_up(R, sublane)
    S_r = _round_up(S, LANE)

    # Lane tile as wide as the budget allows at the minimum sublane count.
    max_ts = max(LANE, (budget // (sublane * itemsize)) // LANE * LANE)
    TS = min(S_r, max_ts)
    # Row tile fills the remaining budget.
    max_tr = max(sublane, (budget // (TS * itemsize)) // sublane * sublane)
    TR = min(R_r, max_tr)

    # Megacore (v7x: 2 TCs/chip): prefer >= 2 row blocks when rows allow it.
    if R_r > sublane and pl.cdiv(R, TR) < 2:
        TR = max(sublane, _round_up(pl.cdiv(R, 2), sublane))
    # Never collapse to a single-step grid if the spatial axis can be split.
    if pl.cdiv(R, TR) * pl.cdiv(S, TS) < 2 and S_r > LANE:
        TS = max(LANE, _round_up(pl.cdiv(S, 2), LANE))
    return TR, TS


def film_forward(x_nchw, y_emb, w_scale, b_scale, w_shift, b_shift,
                 *, extra_buffering=False):
    """FiLM forward: out = x * Linear_scale(y_emb) + Linear_shift(y_emb).

    x_nchw: [B, C, H, W]; y_emb: [B, E]; w_*: [C, E] (PyTorch layout); b_*: [C].
    """
    B, C, H, W = x_nchw.shape
    R, S = B * C, H * W
    dtype = x_nchw.dtype
    itemsize = jnp.dtype(dtype).itemsize

    # ---- gamma/beta: tiny matmuls, left to XLA (it fuses them into
    #      neighbouring ops; a dedicated pallas_call only cost fixed overhead).
    f32 = jnp.float32
    gamma = y_emb.astype(f32) @ w_scale.astype(f32).T + b_scale.astype(f32)  # [B, C]
    beta = y_emb.astype(f32) @ w_shift.astype(f32).T + b_shift.astype(f32)   # [B, C]
    # One fused [R, 2] per-row parameter array: column 0 = scale, 1 = shift.
    gb = jnp.stack([gamma.reshape(R), beta.reshape(R)], axis=1)              # [R, 2] f32

    # ---- streaming FiLM over the flattened activation (no padding copies).
    x_flat = x_nchw.reshape(R, S)
    TR, TS = _choose_tiles(R, S, itemsize)
    grid = (pl.cdiv(R, TR), pl.cdiv(S, TS))

    cost = pl.CostEstimate(
        flops=2 * R * S,                                   # one mul + one add / elem
        transcendentals=0,
        bytes_accessed=2 * R * S * itemsize + R * 2 * 4,   # x read + out write + gb
    )

    if extra_buffering:
        # Optional 3-deep pipelining for very small tiles (tiny R or S);
        # enable when the heuristic still yields sub-256 KiB tiles.
        x_spec = pl.BlockSpec((TR, TS), lambda i, j: (i, j),
                              pipeline_mode=pl.Buffered(3))
    else:
        x_spec = pl.BlockSpec((TR, TS), lambda i, j: (i, j))

    out_flat = pl.pallas_call(
        _film_tile_kernel,
        out_shape=jax.ShapeDtypeStruct((R, S), dtype),
        grid=grid,
        in_specs=[
            x_spec,                                        # activation tile
            pl.BlockSpec((TR, 2), lambda i, j: (i, 0)),    # per-row (scale, shift)
        ],
        out_specs=pl.BlockSpec((TR, TS), lambda i, j: (i, j)),
        compiler_params=pltpu.CompilerParams(
            dimension_semantics=("parallel", "parallel"),
            vmem_limit_bytes=32 * 1024 * 1024,
        ),
        cost_estimate=cost,
        # TODO(synk): pass input_output_aliases={0: 0} when the caller no longer
        # needs x (halves HBM footprint; DMA traffic unchanged).
    )(x_flat, gb)

    # TODO(synk): for tiny spatial extents (H*W << 128) with NHWC activations,
    # a channels-last [B*H*W, C] variant would avoid lane padding entirely.
    return out_flat.reshape(B, C, H, W)


def film_reference(x_nchw, y_emb, w_scale, b_scale, w_shift, b_shift):
    f32 = jnp.float32
    scale = y_emb.astype(f32) @ w_scale.astype(f32).T + b_scale.astype(f32)  # [B, C]
    shift = y_emb.astype(f32) @ w_shift.astype(f32).T + b_shift.astype(f32)  # [B, C]
    out = x_nchw.astype(f32) * scale[:, :, None, None] + shift[:, :, None, None]
    return out.astype(x_nchw.dtype)


def _run_case(key, B, C, H, W, E, dtype=jnp.float32, tol=1e-5):
    kx, ky, kws, kbs, kwh, kbh = jax.random.split(key, 6)
    x = jax.random.normal(kx, (B, C, H, W), dtype=jnp.float32).astype(dtype)
    y_emb = jax.random.normal(ky, (B, E), dtype=jnp.float32)

    # nn.Linear(emb_dim, in_channels)-style init: weight [C, E], bias [C].
    bound = 1.0 / np.sqrt(E)
    w_scale = jax.random.uniform(kws, (C, E), jnp.float32, -bound, bound)
    b_scale = jax.random.uniform(kbs, (C,), jnp.float32, -bound, bound)
    w_shift = jax.random.uniform(kwh, (C, E), jnp.float32, -bound, bound)
    b_shift = jax.random.uniform(kbh, (C,), jnp.float32, -bound, bound)

    out = film_forward(x, y_emb, w_scale, b_scale, w_shift, b_shift)
    out = jax.block_until_ready(out)
    ref = film_reference(x, y_emb, w_scale, b_scale, w_shift, b_shift)
    np.testing.assert_allclose(
        np.asarray(out, dtype=np.float32),
        np.asarray(ref, dtype=np.float32),
        rtol=tol, atol=tol,
    )


if __name__ == "__main__":
    key = jax.random.PRNGKey(0)
    k1, k2, k3 = jax.random.split(key, 3)

    # Primary small case (lane-aligned spatial size).
    _run_case(k1, B=2, C=4, H=16, W=16, E=8)

    # Unaligned case (R % 8 != 0, S % 128 != 0): boundary blocks, no padding.
    _run_case(k2, B=2, C=3, H=5, W=5, E=8)

    # bf16 case: exercises dtype-aware sublane rounding (TR multiple of 16).
    _run_case(k3, B=2, C=5, H=7, W=9, E=8, dtype=jnp.bfloat16, tol=2e-2)

    print("KERNEL_OK")
</pallas_src>

<mosaic_0001>
module attributes {stable_mosaic.version = 11 : i64} {
  func.func @_film_tile_kernel(%arg0: i32, %arg1: i32, %arg2: memref<8x128xf32, #tpu.memory_space<vmem>>, %arg3: memref<8x2xf32, #tpu.memory_space<vmem>>, %arg4: memref<8x128xf32, #tpu.memory_space<vmem>>) attributes {dimension_semantics = [#tpu.dimension_semantics<parallel>, #tpu.dimension_semantics<parallel>], iteration_bounds = array<i64: 1, 2>, scalar_prefetch = 0 : i64, scratch_operands = 0 : i64, tpu.core_type = #tpu.core_type<tc>, window_params = [{transform_indices = @transform_0, window_bounds = array<i64: 8, 128>}, {transform_indices = @transform_1, window_bounds = array<i64: 8, 2>}, {transform_indices = @transform_2, window_bounds = array<i64: 8, 128>}]} {
    %c0 = arith.constant 0 : index
    %c0_0 = arith.constant 0 : index
    %0 = vector.load %arg2[%c0, %c0_0] : memref<8x128xf32, #tpu.memory_space<vmem>>, vector<8x128xf32>
    %c0_1 = arith.constant 0 : index
    %c0_2 = arith.constant 0 : index
    %1 = vector.load %arg3[%c0_1, %c0_2] : memref<8x2xf32, #tpu.memory_space<vmem>>, vector<8x1xf32>
    %c0_3 = arith.constant 0 : index
    %c1 = arith.constant 1 : index
    %2 = vector.load %arg3[%c0_3, %c1] : memref<8x2xf32, #tpu.memory_space<vmem>>, vector<8x1xf32>
    %3 = vector.broadcast %1 : vector<8x1xf32> to vector<8x128xf32>
    %4 = arith.mulf %0, %3 : vector<8x128xf32>
    %5 = vector.broadcast %2 : vector<8x1xf32> to vector<8x128xf32>
    %6 = arith.addf %4, %5 : vector<8x128xf32>
    %c0_4 = arith.constant 0 : index
    %c0_5 = arith.constant 0 : index
    %7 = vector.load %arg4[%c0_4, %c0_5] : memref<8x128xf32, #tpu.memory_space<vmem>>, vector<8x128xf32>
    tpu.vector_store %arg4[%c0_4, %c0_5], %6 {strides = array<i32>} : memref<8x128xf32, #tpu.memory_space<vmem>>, vector<8x128xf32>,
    return
  }
  func.func @transform_0(%arg0: i32, %arg1: i32) -> (i32, i32) {
    %c0_i32 = arith.constant 0 : i32
    return %arg0, %arg1 : i32, i32
  }
  func.func @transform_1(%arg0: i32, %arg1: i32) -> (i32, i32) {
    %c0_i32 = arith.constant 0 : i32
    %c0_i32_0 = arith.constant 0 : i32
    return %arg0, %c0_i32 : i32, i32
  }
  func.func @transform_2(%arg0: i32, %arg1: i32) -> (i32, i32) {
    %c0_i32 = arith.constant 0 : i32
    return %arg0, %arg1 : i32, i32
  }
}

</mosaic_0001>

<bundles_post_ra>
// kernel: tpu_custom_call.1
= control target key start
LH: loop header
LB: loop body
LE: loop exit
PB: predicated region body
PF: predicated region fallthrough
CT: control target
= control target key end

     0   :  { %7 = vsyncpa [#allocation3], 0  ;;  %s667_s0 = inlined_call_operand.hbm [shape: f32[8,256], index: 0, kind: input, shape index: {}]   ;;  %s668_s1 = inlined_call_operand.vmem [shape: f32[8,2], index: 1, kind: input, shape index: {}]   ;;  %s669_s2 = inlined_call_operand.hbm [shape: f32[8,256], index: 2, kind: output, shape index: {}]  }
   0x1   :  { %9 = vsyncpa [#allocation3 + $0x1], 0 }
   0x2   :  { %10 = vsyncpa [#allocation4], 0 }
   0x3   :  { %12 = vsyncpa [#allocation4 + $0x1], 0  ;;  %s530_s9 = smov 0   ;;  %s532_s10 = smov 0  }
   0x4   :  { %s534_s11 = smov 0   ;;  %s536_s12 = smov 0  }
   0x5   :  { %s538_s13 = smov 0   ;;  %s540_s14 = smov 0  }
   0x6 LB: > { %s321_s15 = sadd.s32 4294967295, %s509_s14   ;;  %s322_s16 = sadd.s32 4294967294, %s509_s14   ;;  %s509_s14 = sphi %s540_s14, %s18_s14   ;;  %s505_s13 = sphi %s538_s13, %s681_s13   ;;  %s501_s12 = sphi %s536_s12, %s680_s12   ;;  %s497_s11 = sphi %s534_s11, %s679_s11   ;;  %s493_s10 = sphi %s532_s10, %s678_s10   ;;  %s489_s9 = sphi %s530_s9, %s677_s9  }
   0x7   : > { %s27_s17 = sadd.s32 1, %s505_s13  ;;  %s39_s18 = sadd.s32 1, %s497_s11 }
   0x8   : > { %p28_p0 = scmp.ge.s32.totalorder %s27_s17, 2  ;;  %p46_p1 = scmp.ne.s32.totalorder %s497_s11, %s493_s10 }
   0x9   : > { %p47_p2 = scmp.eq.s32.totalorder %s509_s14, 0  ;;  %p52_p3 = scmp.ne.s32.totalorder %s493_s10, %s489_s9 }
   0xa   : > { %s683_s17 = smov (%p28_p0, %s27_s17), 0  ;;  %p53_p5 = scmp.eq.s32.totalorder %s321_s15, 0 }
   0xb   : > { %p571_p4 = por %p47_p2, %p46_p1  ;;  %s35_s20 = ssub.s32 %s505_s13, %s683_s17 }
   0xc   : > { %p104_p6 = scmp.eq.s32.totalorder %s321_s15, 1  ;;  %p37_p7 = scmp.eq.s32.totalorder %s35_s20, 0 }
   0xd   : > { %p577_p8 = por %p53_p5, %p52_p3  ;;  %p110_p10 = scmp.eq.s32.totalorder %s322_s16, 1 }
   0xe   : > { %p581_p9 = por %p104_p6, %p46_p1  ;;  %p347_p13 = scmp.lt.s32.totalorder %s509_s14, 2 }
   0xf   : > { %s586_s23 = scalar_select %p37_p7, %s497_s11, %s39_s18  }
  0x10   : > { %p588_p11 = por %p110_p10, %p52_p3  ;;  %s137_s25 = sand.u32 1, %s497_s11  }
  0x11   : > { %s326_s26 = sshll.u32 %s137_s25, 3  ;;  %s327_s27 = sshll.u32 %s505_s13, 7 }
  0x12   : > { %s673_s24 = scalar_select %p588_p11, 1, 0 }
  0x13   : > { %s148_s30 = scalar_lea.hbm %s667_s0, %s327_s27  ;;  %s141_s3 = scalar_lea.vmem [#allocation2], %s326_s26 }
  0x14   : > { %s150_s4 = sshll.u32 %s141_s3, 4  ;;  %p601_p0 = pnand %p347_p13, %p571_p4  ;;  %s151_s4 = int_to_ptr.vmem [resolvable:$true] %s150_s4 }
  0x15   : > { %p328_p1 = scmp.ge.s32.totalorder %s509_s14, 1  ;;  %p155_p2 = scmp.lt.s32.totalorder %s509_s14, 3 }
  0x16   : > { %s138_s6 = scalar_lea.sflag [#allocation3], %s137_s25  ;;  %p403_p3 = pneg %p601_p0 }
  0x17   : > { %s414_s7 = scalar_lea.vmem %s151_s4, 128  ;;  %s511_s8 = smov [#allocation2]  }
  0x18   : > { %p415_p5 = scmp.ne.s32.totalorder %s151_s4, %s414_s7  ;;  %s419_s15 = sshll.u32 %s511_s8, 4  ;;  %s420_s15 = int_to_ptr.vmem [resolvable:$false] %s419_s15 }
  0x19   : > { %s421_s16 = scalar_lea.vmem %s420_s15, 256  ;;  %p422_p10 = scmp.lt.s32.totalorder %s151_s4, %s420_s15 }
  0x1a   : > { %p417_p6 = pnand %p415_p5, %p403_p3  ;;  %p423_p12 = scmp.lt.s32.totalorder %s421_s16, %s414_s7 }
  0x1c   : > { %p418_p7 = pneg %p417_p6  ;;  %p424_p4 = por %p423_p12, %p422_p10 }
  0x1e   : > { %p425_p13 = pnand %p424_p4, %p418_p7 }
  0x20   : > { %428 = shalt.err (!%p425_p13)
}
  0x21   : > { %342 = dma.hbm_to_vmem [thread:$0]  (!%p601_p0), %s148_s30, 128, %s151_s4, %s138_s6  }
  0x22   : > { %p156_p11 = pnand %p328_p1, %p155_p2 }
  0x23   : > { %s616_s18 = sand.u32 (!%p156_p11), 1, %s493_s10  }
  0x24   : > { %159 = sbr.rel (%p156_p11) target bundleno = 188 (0xbc), region = 28  ;;  %s329_s19 = sshll.u32 (!%p156_p11), %s616_s18, 3 }
  0x25   : > { %s162_s20 = scalar_lea.sflag (!%p156_p11), [#allocation3], %s616_s18  ;;  %s165_s25 = scalar_lea.vmem (!%p156_p11), [#allocation2], %s329_s19 }
  0x29   : > { %480 = dma.done.wait (%p577_p8), %s162_s20, 128  }
  0x2a   : > { %482 = vsyncadd (%p577_p8), %s162_s20, 4294967168  ;;  %v512_v0 = vmov 0   ;;  %v195_v1 = vld [vmem:[%s668_s1] sm:$0xff]  ;;  %v513_v2 = vmov 1   ;;  %s332_s28 = sshll.u32 %s501_s12, 7  ;;  %s189_s29 = scalar_lea.vmem [#allocation5], %s329_s19 }
  0x2b   : > { %399 = vset.pattern.permute.xlu0 %v512_v0  ;;  %v194_v4 = vld [vmem:[%s165_s25] sm:$0xff]  ;;  %s224_s30 = sshll.u32 %s189_s29, 4  ;;  %s222_s4 = scalar_lea.hbm %s669_s2, %s332_s28  ;;  %s225_s30 = int_to_ptr.vmem [resolvable:$true] %s224_s30 }
  0x2c   : > { %198 = vperm.xlu0 %399, %v195_v1   ;;  %s209_s5 = scalar_lea.sflag [#allocation4], %s616_s18  ;;  %s429_s6 = scalar_lea.vmem %s225_s30, 128 }
  0x2d   : > { %p430_p8 = scmp.ne.s32.totalorder %s225_s30, %s429_s6  ;;  %s514_s7 = smov [#allocation5]  }
  0x2e   : > { %s433_s8 = sshll.u32 %s514_s7, 4  ;;  %s434_s8 = int_to_ptr.vmem [resolvable:$false] %s433_s8 }
  0x2f   : > { %p431_p11 = pnand %p430_p8, %p581_p9  ;;  %s435_s12 = scalar_lea.vmem %s434_s8, 256 }
  0x30   : > { %400 = vset.pattern.permute.xlu0 %v513_v2  ;;  %p436_p0 = scmp.lt.s32.totalorder %s225_s30, %s434_s8  ;;  %p437_p1 = scmp.lt.s32.totalorder %s435_s12, %s429_s6 }
  0x31   : > { %203 = vperm.xlu0 %400, %v195_v1   ;;  %p432_p12 = pneg %p431_p11 }
  0x32   : > { %p438_p2 = por %p437_p1, %p436_p0 }
  0x34   : > { %p439_p3 = pnand %p438_p2, %p432_p12 }
  0xa7   : > { %v199_v3 = vpop.permute.xlu0 %198 }
  0xa8   : > { %v201_v5 = vmul.f32 %v199_v3, %v194_v4 }
  0xac   : > { %v204_v6 = vpop.permute.xlu0 %203 }
  0xad   : > { %v206_v7 = vadd.f32 %v204_v6, %v201_v5 }
  0xaf   : > { %207 = vst [vmem:[%s189_s29] sm:$0xff] %v206_v7 }
  0xb0   : > { %442 = shalt.err (!%p439_p3)
}
  0xb1   : > { %s443_s15 = scalar_lea.hbm %s222_s4, 128  ;;  %s447_s19 = scalar_lea.hbm %s669_s2, 256 }
  0xb2   : > { %p444_p5 = scmp.ne.s32.totalorder %s222_s4, %s443_s15  ;;  %p448_p10 = scmp.lt.s32.totalorder %s222_s4, %s669_s2 }
  0xb3   : > { %p449_p4 = scmp.lt.s32.totalorder %s447_s19, %s443_s15 }
  0xb4   : > { %p445_p6 = pnand %p444_p5, %p581_p9 }
  0xb5   : > { %p450_p13 = por %p449_p4, %p448_p10 }
  0xb6   : > { %p446_p7 = pneg %p445_p6 }
  0xb8   : > { %p451_p8 = pnand %p450_p13, %p446_p7 }
  0xba   : > { %454 = shalt.err (!%p451_p8)
}
  0xbb   : > { %337 = dma.vmem_to_hbm [thread:$0]  (%p581_p9), %s225_s30, 128, %s222_s4, %s209_s5  }
  0xbc PF: > { %s236_s26 = sand.u32 1, %s489_s9   ;;  %p675_p11 = scmp.ne.s32.totalorder %s673_s24, 0 }
  0xbd   : > { %p676_p12 = scmp.ge.s32.totalorder %s509_s14, 2  ;;  %s237_s27 = scalar_lea.sflag [#allocation4], %s236_s26 }
  0xbf   : > { %p344_p0 = pnand %p676_p12, %p675_p11 }
  0xc1   : > { %p345_p1 = pneg %p344_p0 }
  0xc3   : > { %484 = dma.done.wait (%p345_p1), %s237_s27, 128  }
  0xc4   : > { %486 = vsyncadd (%p345_p1), %s237_s27, 4294967168  ;;  %s18_s14 = sadd.s32 1, %s509_s14   ;;  %s677_s9 = smov %s493_s10 }
  0xc5   : > { %p15_p2 = scmp.ge.s32.totalorder %s18_s14, 4   ;;  %s678_s10 = smov %s497_s11 }
  0xc6   : > { %s679_s11 = smov %s586_s23  ;;  %s680_s12 = smov %s505_s13 }
  0xc7   : > { %s681_s13 = smov %s683_s17  ;;  %17 = sbr.rel (!%p15_p2) target bundleno = 6 (0x6), region = 76 }
  0xcc   :  { %242 = vsyncpa [#allocation3], 1 }
  0xcd   :  { %244 = vsyncpa [#allocation3 + $0x1], 1 }
  0xce   :  { %245 = vsyncpa [#allocation4], 1 }
  0xcf   :  { %247 = vsyncpa [#allocation4 + $0x1], 1 }

</bundles_post_ra>
